<compile_context>
chip_gen: v6e
topology: v6e:2x2x1
jax: 0.10.0
libtpu: 0.0.40
codegen_flags: <defaults>
</compile_context>

<pallas_src>
import jax
import jax.numpy as jnp
from jax.experimental import pallas as pl
from jax.experimental.pallas import tpu as pltpu

KSIZE = 15
PAD = 7  # ReflectionPad2d(7)


# ----------------------------------------------------------------------------
# Wrapper-side helpers (plain XLA, tiny)
# ----------------------------------------------------------------------------
def gaussian_kernel_1d(kernel_size: int, width):
    """1D factor of the 15x15 gaussian kernel; outer(k1, k1) matches the
    normalized 2-D gaussian kernel of the original code (sum + 1e-8 norm)."""
    half = (kernel_size - 1) / 2.0
    ax = jnp.arange(kernel_size, dtype=jnp.float32) - half
    k = jnp.exp(-(ax * ax) / (2.0 * width * width + 1e-8))
    return k / jnp.sqrt(jnp.sum(k) ** 2 + 1e-8)


def reflect_blur_matrix(length: int, k1d):
    """Band matrix B (length x length) such that B @ x applies the 15-tap 1-D
    gaussian blur along the leading axis with ReflectionPad(7) boundaries.
    Requires length >= PAD + 1 (same restriction as torch ReflectionPad2d)."""
    pos = jnp.arange(length)[:, None] + jnp.arange(KSIZE)[None, :] - PAD  # (L,15)
    pos = jnp.abs(pos)                                            # reflect left
    pos = jnp.where(pos > length - 1, 2 * (length - 1) - pos, pos)  # reflect right
    rows = jnp.broadcast_to(jnp.arange(length)[:, None], (length, KSIZE))
    vals = jnp.broadcast_to(k1d[None, :].astype(jnp.float32), (length, KSIZE))
    mat = jnp.zeros((length, length), jnp.float32)
    return mat.at[rows, pos].add(vals)                            # (L, L)


def _choose_batch(nc: int, H: int, W: int, budget_bytes: int = 24 << 20) -> int:
    """Planes per grid step: fit VMEM, prefer B*H >= 256 (MXU fill) while
    keeping >= 2 grid steps so v7x's two TensorCores both get work."""
    divisors = [b for b in range(1, nc + 1) if nc % b == 0]
    fits = [b for b in divisors if 8 * b * H * W * 4 <= budget_bytes]
    if not fits:
        return 1
    good = [b for b in fits if b * H >= 256 and nc // b >= 2]
    if good:
        return min(good)
    good = [b for b in fits if nc // b >= 2]
    if good:
        return max(good)
    return max(fits)


# ----------------------------------------------------------------------------
# Pallas kernel: B planes per grid step
# ----------------------------------------------------------------------------
def _distort_kernel(img_ref, awgn_ref, pois_ref, kv_ref, kht_ref, out_ref):
    b_planes, h, w = img_ref.shape

    # Horizontal blur pass for all planes at once on the MXU:
    #   (B*H, W)bf16 @ (W, W)bf16 -> f32   (reflection folded into Kh^T)
    x = img_ref[...].reshape(b_planes * h, w).astype(jnp.bfloat16)
    xh = jnp.dot(x, kht_ref[...], preferred_element_type=jnp.float32)
    xh = xh.reshape(b_planes, h, w).astype(jnp.bfloat16)

    kv = kv_ref[...]                                   # (H, H) bf16
    for b in range(b_planes):                          # static unroll, B small
        # Vertical blur pass: (H, H) @ (H, W) on the MXU, f32 accumulate.
        yb = jnp.dot(kv, xh[b], preferred_element_type=jnp.float32)
        # Additive gaussian white noise (pre-scaled by awgn_std[c] in wrapper).
        yb = yb + awgn_ref[b].astype(jnp.float32)
        # Signal-dependent ("poisson") noise; max() guards sqrt(neg) -> NaN.
        yb = yb + pois_ref[b].astype(jnp.float32) * jnp.sqrt(jnp.maximum(yb, 0.0))
        out_ref[b] = jnp.clip(yb, 0.0, 1.0)


# ----------------------------------------------------------------------------
# Public wrapper
# ----------------------------------------------------------------------------
def distorter_forward(img, key,
                      gaussian_noise_std=25.0 / 255.0,
                      poisson_noise_std=10.0 / 255.0,
                      gaussian_blur_std=2.0):
    """JAX/Pallas equivalent of Distorter(awgn, poisson, blur).forward(img)."""
    N, C, H, W = img.shape
    img = img.astype(jnp.float32)

    k_blur, k_awgn, k_pois, k_n1, k_n2 = jax.random.split(key, 5)
    # _check_input with scalar + center=0 (+clip on zero) -> uniform in [0, std]
    blur_factor = jax.random.uniform(k_blur, (), jnp.float32, 0.0, gaussian_blur_std)
    awgn_std = jax.random.uniform(k_awgn, (C,), jnp.float32, 0.0, gaussian_noise_std)
    pois_std = jax.random.uniform(k_pois, (C,), jnp.float32, 0.0, poisson_noise_std)

    # Separable blur + reflection padding as small band matrices (built once),
    # stored bf16 for native-rate MXU matmuls.
    k1d = gaussian_kernel_1d(KSIZE, blur_factor)
    kv = reflect_blur_matrix(H, k1d).astype(jnp.bfloat16)       # (H, H) vertical
    kht = reflect_blur_matrix(W, k1d).T.astype(jnp.bfloat16)    # (W, W) horizontal^T

    nc = N * C
    planes = img.reshape(nc, H, W)
    # Pre-scaled noise fields (scale + bf16 cast fuse into the RNG fusion).
    awgn_noise = (jax.random.normal(k_n1, (N, C, H, W), jnp.float32)
                  * awgn_std[None, :, None, None]
                  ).reshape(nc, H, W).astype(jnp.bfloat16)
    pois_noise = (jax.random.normal(k_n2, (N, C, H, W), jnp.float32)
                  * pois_std[None, :, None, None]
                  ).reshape(nc, H, W).astype(jnp.bfloat16)

    B = _choose_batch(nc, H, W)
    # Block VMEM estimate: (img f32 + 2 noise bf16 + out f32) double-buffered
    # plus the two constant bf16 blur matrices (double-buffered by default).
    est = 2 * (4 + 2 + 2 + 4) * B * H * W + 2 * 2 * (H * H + W * W)
    vmem_limit = int(min(max(2 * est, 32 << 20), 60 << 20))  # stay under v7x 64 MiB

    out = pl.pallas_call(
        _distort_kernel,
        out_shape=jax.ShapeDtypeStruct((nc, H, W), jnp.float32),
        grid=(nc // B,),
        in_specs=[
            pl.BlockSpec((B, H, W), lambda i: (i, 0, 0)),   # image planes (f32)
            pl.BlockSpec((B, H, W), lambda i: (i, 0, 0)),   # awgn noise (bf16)
            pl.BlockSpec((B, H, W), lambda i: (i, 0, 0)),   # poisson noise (bf16)
            pl.BlockSpec((H, H), lambda i: (0, 0)),         # Kv   (constant block)
            pl.BlockSpec((W, W), lambda i: (0, 0)),         # Kh^T (constant block)
        ],
        out_specs=pl.BlockSpec((B, H, W), lambda i: (i, 0, 0)),
        compiler_params=pltpu.CompilerParams(
            dimension_semantics=("parallel",),
            vmem_limit_bytes=vmem_limit),
    )(planes, awgn_noise, pois_noise, kv, kht)

    # factors: one row per forward call: [blur, awgn_rgb..., poisson_rgb...]
    factors = jnp.stack(
        [jnp.concatenate([blur_factor[None], awgn_std, pois_std])])
    return out.reshape(N, C, H, W), factors


if __name__ == "__main__":
    key = jax.random.PRNGKey(0)
    k_img, k_fwd = jax.random.split(key)
    # Small but TPU-friendly shape: W=128 -> lane-dense blocks, H=32 (>2*PAD).
    N, C, H, W = 2, 3, 32, 128
    img = jax.random.uniform(k_img, (N, C, H, W), jnp.float32)   # values in [0, 1]

    out, factors = distorter_forward(img, k_fwd)
    jax.block_until_ready((out, factors))

    assert out.shape == (N, C, H, W) and out.dtype == jnp.float32
    assert factors.shape == (1, 1 + 2 * C)
    assert bool(jnp.all(jnp.isfinite(out)))
    assert bool(jnp.all((out >= 0.0) & (out <= 1.0)))
    print("KERNEL_OK")
</pallas_src>

<mosaic_0001>
module attributes {stable_mosaic.version = 11 : i64} {
  func.func @_distort_kernel(%arg0: i32, %arg1: memref<3x32x128xf32, #tpu.memory_space<vmem>>, %arg2: memref<3x32x128xbf16, #tpu.memory_space<vmem>>, %arg3: memref<3x32x128xbf16, #tpu.memory_space<vmem>>, %arg4: memref<32x32xbf16, #tpu.memory_space<vmem>>, %arg5: memref<128x128xbf16, #tpu.memory_space<vmem>>, %arg6: memref<3x32x128xf32, #tpu.memory_space<vmem>>) attributes {dimension_semantics = [#tpu.dimension_semantics<parallel>], iteration_bounds = array<i64: 2>, scalar_prefetch = 0 : i64, scratch_operands = 0 : i64, tpu.core_type = #tpu.core_type<tc>, window_params = [{transform_indices = @transform_0, window_bounds = array<i64: 3, 32, 128>}, {transform_indices = @transform_1, window_bounds = array<i64: 3, 32, 128>}, {transform_indices = @transform_2, window_bounds = array<i64: 3, 32, 128>}, {pipeline_mode = #tpu.pipeline_mode<synchronous>, transform_indices = @transform_3, window_bounds = array<i64: 32, 32>}, {pipeline_mode = #tpu.pipeline_mode<synchronous>, transform_indices = @transform_4, window_bounds = array<i64: 128, 128>}, {transform_indices = @transform_5, window_bounds = array<i64: 3, 32, 128>}]} {
    %c0 = arith.constant 0 : index
    %c0_0 = arith.constant 0 : index
    %c0_1 = arith.constant 0 : index
    %0 = vector.load %arg1[%c0, %c0_0, %c0_1] : memref<3x32x128xf32, #tpu.memory_space<vmem>>, vector<3x32x128xf32>
    %1 = vector.shape_cast %0 : vector<3x32x128xf32> to vector<96x128xf32>
    %2 = arith.truncf %1 : vector<96x128xf32> to vector<96x128xbf16>
    %c0_2 = arith.constant 0 : index
    %c0_3 = arith.constant 0 : index
    %3 = vector.load %arg5[%c0_2, %c0_3] : memref<128x128xbf16, #tpu.memory_space<vmem>>, vector<128x128xbf16>
    %cst = arith.constant dense<0.000000e+00> : vector<96x128xf32>
    %4 = tpu.matmul %2, %3, %cst {dimension_numbers = #tpu.dot_dimension_numbers<[1], [0], [0], [1], [0, 0, 1, 1], [], []>} : vector<96x128xbf16>, vector<128x128xbf16>, vector<96x128xf32> -> vector<96x128xf32>
    %5 = vector.shape_cast %4 : vector<96x128xf32> to vector<3x32x128xf32>
    %6 = arith.truncf %5 : vector<3x32x128xf32> to vector<3x32x128xbf16>
    %c0_4 = arith.constant 0 : index
    %c0_5 = arith.constant 0 : index
    %7 = vector.load %arg4[%c0_4, %c0_5] : memref<32x32xbf16, #tpu.memory_space<vmem>>, vector<32x32xbf16>
    %8 = vector.extract_strided_slice %6 {offsets = [0, 0, 0], sizes = [1, 32, 128], strides = [1, 1, 1]} : vector<3x32x128xbf16> to vector<1x32x128xbf16>
    %9 = vector.shape_cast %8 : vector<1x32x128xbf16> to vector<32x128xbf16>
    %cst_6 = arith.constant dense<0.000000e+00> : vector<32x128xf32>
    %10 = tpu.matmul %7, %9, %cst_6 {dimension_numbers = #tpu.dot_dimension_numbers<[1], [0], [0], [1], [0, 0, 1, 1], [], []>} : vector<32x32xbf16>, vector<32x128xbf16>, vector<32x128xf32> -> vector<32x128xf32>
    %c0_7 = arith.constant 0 : index
    %c0_8 = arith.constant 0 : index
    %c0_9 = arith.constant 0 : index
    %11 = vector.load %arg2[%c0_7, %c0_8, %c0_9] : memref<3x32x128xbf16, #tpu.memory_space<vmem>>, vector<1x32x128xbf16>
    %12 = vector.shape_cast %11 : vector<1x32x128xbf16> to vector<32x128xbf16>
    %13 = arith.extf %12 : vector<32x128xbf16> to vector<32x128xf32>
    %14 = arith.addf %10, %13 : vector<32x128xf32>
    %c0_10 = arith.constant 0 : index
    %c0_11 = arith.constant 0 : index
    %c0_12 = arith.constant 0 : index
    %15 = vector.load %arg3[%c0_10, %c0_11, %c0_12] : memref<3x32x128xbf16, #tpu.memory_space<vmem>>, vector<1x32x128xbf16>
    %16 = vector.shape_cast %15 : vector<1x32x128xbf16> to vector<32x128xbf16>
    %17 = arith.extf %16 : vector<32x128xbf16> to vector<32x128xf32>
    %cst_13 = arith.constant 0.000000e+00 : f32
    %18 = vector.broadcast %cst_13 : f32 to vector<32x128xf32>
    %19 = arith.maximumf %14, %18 : vector<32x128xf32>
    %20 = math.sqrt %19 : vector<32x128xf32>
    %21 = arith.mulf %17, %20 : vector<32x128xf32>
    %22 = arith.addf %14, %21 : vector<32x128xf32>
    %cst_14 = arith.constant 0.000000e+00 : f32
    %cst_15 = arith.constant 1.000000e+00 : f32
    %23 = vector.broadcast %cst_14 : f32 to vector<32x128xf32>
    %24 = arith.maximumf %23, %22 : vector<32x128xf32>
    %25 = vector.broadcast %cst_15 : f32 to vector<32x128xf32>
    %26 = arith.minimumf %25, %24 : vector<32x128xf32>
    %c0_16 = arith.constant 0 : index
    %c0_17 = arith.constant 0 : index
    %c0_18 = arith.constant 0 : index
    %27 = vector.load %arg6[%c0_16, %c0_17, %c0_18] : memref<3x32x128xf32, #tpu.memory_space<vmem>>, vector<1x32x128xf32>
    %28 = vector.shape_cast %27 : vector<1x32x128xf32> to vector<32x128xf32>
    %29 = vector.shape_cast %26 : vector<32x128xf32> to vector<1x32x128xf32>
    tpu.vector_store %arg6[%c0_16, %c0_17, %c0_18], %29 {strides = array<i32>} : memref<3x32x128xf32, #tpu.memory_space<vmem>>, vector<1x32x128xf32>,
    %30 = vector.extract_strided_slice %6 {offsets = [1, 0, 0], sizes = [1, 32, 128], strides = [1, 1, 1]} : vector<3x32x128xbf16> to vector<1x32x128xbf16>
    %31 = vector.shape_cast %30 : vector<1x32x128xbf16> to vector<32x128xbf16>
    %cst_19 = arith.constant dense<0.000000e+00> : vector<32x128xf32>
    %32 = tpu.matmul %7, %31, %cst_19 {dimension_numbers = #tpu.dot_dimension_numbers<[1], [0], [0], [1], [0, 0, 1, 1], [], []>} : vector<32x32xbf16>, vector<32x128xbf16>, vector<32x128xf32> -> vector<32x128xf32>
    %c1 = arith.constant 1 : index
    %c0_20 = arith.constant 0 : index
    %c0_21 = arith.constant 0 : index
    %33 = vector.load %arg2[%c1, %c0_20, %c0_21] : memref<3x32x128xbf16, #tpu.memory_space<vmem>>, vector<1x32x128xbf16>
    %34 = vector.shape_cast %33 : vector<1x32x128xbf16> to vector<32x128xbf16>
    %35 = arith.extf %34 : vector<32x128xbf16> to vector<32x128xf32>
    %36 = arith.addf %32, %35 : vector<32x128xf32>
    %c1_22 = arith.constant 1 : index
    %c0_23 = arith.constant 0 : index
    %c0_24 = arith.constant 0 : index
    %37 = vector.load %arg3[%c1_22, %c0_23, %c0_24] : memref<3x32x128xbf16, #tpu.memory_space<vmem>>, vector<1x32x128xbf16>
    %38 = vector.shape_cast %37 : vector<1x32x128xbf16> to vector<32x128xbf16>
    %39 = arith.extf %38 : vector<32x128xbf16> to vector<32x128xf32>
    %cst_25 = arith.constant 0.000000e+00 : f32
    %40 = vector.broadcast %cst_25 : f32 to vector<32x128xf32>
    %41 = arith.maximumf %36, %40 : vector<32x128xf32>
    %42 = math.sqrt %41 : vector<32x128xf32>
    %43 = arith.mulf %39, %42 : vector<32x128xf32>
    %44 = arith.addf %36, %43 : vector<32x128xf32>
    %cst_26 = arith.constant 0.000000e+00 : f32
    %cst_27 = arith.constant 1.000000e+00 : f32
    %45 = vector.broadcast %cst_26 : f32 to vector<32x128xf32>
    %46 = arith.maximumf %45, %44 : vector<32x128xf32>
    %47 = vector.broadcast %cst_27 : f32 to vector<32x128xf32>
    %48 = arith.minimumf %47, %46 : vector<32x128xf32>
    %c1_28 = arith.constant 1 : index
    %c0_29 = arith.constant 0 : index
    %c0_30 = arith.constant 0 : index
    %49 = vector.load %arg6[%c1_28, %c0_29, %c0_30] : memref<3x32x128xf32, #tpu.memory_space<vmem>>, vector<1x32x128xf32>
    %50 = vector.shape_cast %49 : vector<1x32x128xf32> to vector<32x128xf32>
    %51 = vector.shape_cast %48 : vector<32x128xf32> to vector<1x32x128xf32>
    tpu.vector_store %arg6[%c1_28, %c0_29, %c0_30], %51 {strides = array<i32>} : memref<3x32x128xf32, #tpu.memory_space<vmem>>, vector<1x32x128xf32>,
    %52 = vector.extract_strided_slice %6 {offsets = [2, 0, 0], sizes = [1, 32, 128], strides = [1, 1, 1]} : vector<3x32x128xbf16> to vector<1x32x128xbf16>
    %53 = vector.shape_cast %52 : vector<1x32x128xbf16> to vector<32x128xbf16>
    %cst_31 = arith.constant dense<0.000000e+00> : vector<32x128xf32>
    %54 = tpu.matmul %7, %53, %cst_31 {dimension_numbers = #tpu.dot_dimension_numbers<[1], [0], [0], [1], [0, 0, 1, 1], [], []>} : vector<32x32xbf16>, vector<32x128xbf16>, vector<32x128xf32> -> vector<32x128xf32>
    %c2 = arith.constant 2 : index
    %c0_32 = arith.constant 0 : index
    %c0_33 = arith.constant 0 : index
    %55 = vector.load %arg2[%c2, %c0_32, %c0_33] : memref<3x32x128xbf16, #tpu.memory_space<vmem>>, vector<1x32x128xbf16>
    %56 = vector.shape_cast %55 : vector<1x32x128xbf16> to vector<32x128xbf16>
    %57 = arith.extf %56 : vector<32x128xbf16> to vector<32x128xf32>
    %58 = arith.addf %54, %57 : vector<32x128xf32>
    %c2_34 = arith.constant 2 : index
    %c0_35 = arith.constant 0 : index
    %c0_36 = arith.constant 0 : index
    %59 = vector.load %arg3[%c2_34, %c0_35, %c0_36] : memref<3x32x128xbf16, #tpu.memory_space<vmem>>, vector<1x32x128xbf16>
    %60 = vector.shape_cast %59 : vector<1x32x128xbf16> to vector<32x128xbf16>
    %61 = arith.extf %60 : vector<32x128xbf16> to vector<32x128xf32>
    %cst_37 = arith.constant 0.000000e+00 : f32
    %62 = vector.broadcast %cst_37 : f32 to vector<32x128xf32>
    %63 = arith.maximumf %58, %62 : vector<32x128xf32>
    %64 = math.sqrt %63 : vector<32x128xf32>
    %65 = arith.mulf %61, %64 : vector<32x128xf32>
    %66 = arith.addf %58, %65 : vector<32x128xf32>
    %cst_38 = arith.constant 0.000000e+00 : f32
    %cst_39 = arith.constant 1.000000e+00 : f32
    %67 = vector.broadcast %cst_38 : f32 to vector<32x128xf32>
    %68 = arith.maximumf %67, %66 : vector<32x128xf32>
    %69 = vector.broadcast %cst_39 : f32 to vector<32x128xf32>
    %70 = arith.minimumf %69, %68 : vector<32x128xf32>
    %c2_40 = arith.constant 2 : index
    %c0_41 = arith.constant 0 : index
    %c0_42 = arith.constant 0 : index
    %71 = vector.load %arg6[%c2_40, %c0_41, %c0_42] : memref<3x32x128xf32, #tpu.memory_space<vmem>>, vector<1x32x128xf32>
    %72 = vector.shape_cast %71 : vector<1x32x128xf32> to vector<32x128xf32>
    %73 = vector.shape_cast %70 : vector<32x128xf32> to vector<1x32x128xf32>
    tpu.vector_store %arg6[%c2_40, %c0_41, %c0_42], %73 {strides = array<i32>} : memref<3x32x128xf32, #tpu.memory_space<vmem>>, vector<1x32x128xf32>,
    return
  }
  func.func @transform_0(%arg0: i32) -> (i32, i32, i32) {
    %c0_i32 = arith.constant 0 : i32
    %c0_i32_0 = arith.constant 0 : i32
    %c0_i32_1 = arith.constant 0 : i32
    return %arg0, %c0_i32, %c0_i32_0 : i32, i32, i32
  }
  func.func @transform_1(%arg0: i32) -> (i32, i32, i32) {
    %c0_i32 = arith.constant 0 : i32
    %c0_i32_0 = arith.constant 0 : i32
    %c0_i32_1 = arith.constant 0 : i32
    return %arg0, %c0_i32, %c0_i32_0 : i32, i32, i32
  }
  func.func @transform_2(%arg0: i32) -> (i32, i32, i32) {
    %c0_i32 = arith.constant 0 : i32
    %c0_i32_0 = arith.constant 0 : i32
    %c0_i32_1 = arith.constant 0 : i32
    return %arg0, %c0_i32, %c0_i32_0 : i32, i32, i32
  }
  func.func @transform_3(%arg0: i32) -> (i32, i32) {
    %c0_i32 = arith.constant 0 : i32
    %c0_i32_0 = arith.constant 0 : i32
    %c0_i32_1 = arith.constant 0 : i32
    return %c0_i32, %c0_i32_0 : i32, i32
  }
  func.func @transform_4(%arg0: i32) -> (i32, i32) {
    %c0_i32 = arith.constant 0 : i32
    %c0_i32_0 = arith.constant 0 : i32
    %c0_i32_1 = arith.constant 0 : i32
    return %c0_i32, %c0_i32_0 : i32, i32
  }
  func.func @transform_5(%arg0: i32) -> (i32, i32, i32) {
    %c0_i32 = arith.constant 0 : i32
    %c0_i32_0 = arith.constant 0 : i32
    %c0_i32_1 = arith.constant 0 : i32
    return %arg0, %c0_i32, %c0_i32_0 : i32, i32, i32
  }
}

</mosaic_0001>

<bundles_post_ra>
// kernel: tpu_custom_call.1
= control target key start
LH: loop header
LB: loop body
LE: loop exit
PB: predicated region body
PF: predicated region fallthrough
CT: control target
= control target key end

     0   :  { %s2200_s0 = inlined_call_operand.hbm [shape: f32[6,32,128], index: 0, kind: input, shape index: {}]   ;;  %s2201_s1 = inlined_call_operand.hbm [shape: bf16[6,32,128], index: 1, kind: input, shape index: {}]   ;;  %s2202_s2 = inlined_call_operand.hbm [shape: bf16[6,32,128], index: 2, kind: input, shape index: {}]   ;;  %s2203_s3 = inlined_call_operand.hbm [shape: bf16[32,32], index: 3, kind: input, shape index: {}]   ;;  %s2204_s4 = inlined_call_operand.hbm [shape: bf16[128,128], index: 4, kind: input, shape index: {}]   ;;  %s2205_s5 = inlined_call_operand.hbm [shape: f32[6,32,128], index: 5, kind: output, shape index: {}]  }
   0x1   :  { %2221 = sst [smem:[#allocation19_spill]] %s2200_s0 }
   0x2   :  { %2222 = sst [smem:[#allocation20_spill]] %s2201_s1 }
   0x3   :  { %10 = vsyncpa [#allocation3], 0 }
   0x4   :  { %12 = vsyncpa [#allocation3 + $0x1], 0 }
   0x5   :  { %13 = vsyncpa [#allocation6], 0 }
   0x6   :  { %15 = vsyncpa [#allocation6 + $0x1], 0 }
   0x7   :  { %16 = vsyncpa [#allocation9], 0 }
   0x8   :  { %17 = vsyncpa [#allocation4], 0 }
   0x9   :  { %19 = vsyncpa [#allocation4 + $0x1], 0  ;;  %s1634_s18 = smov 0   ;;  %s1636_s19 = smov 0  }
   0xa   :  { %s1638_s20 = smov 0   ;;  %s1640_s21 = smov 0  }
   0xb LB: > { %2223 = sst [smem:[#allocation16_spill]] %s1586_s20  ;;  %s1655_s22 = sadd.s32 4294967295, %s1590_s21   ;;  %s1590_s21 = sphi %s1640_s21, %s2249_s21   ;;  %s1586_s20 = sphi %s1638_s20, %s2251_s20   ;;  %s1582_s19 = sphi %s1636_s19, %s2253_s19   ;;  %s1578_s18 = sphi %s1634_s18, %s2252_s18  }
   0xc   : > { %s1054_s23 = sadd.s32 4294967294, %s1590_s21   ;;  %s1659_s24 = sadd.s32 1, %s1590_s21  }
   0xd   : > { %2224 = sst [smem:[#allocation17_spill]] %s1659_s24  ;;  %s32_s25 = sadd.s32 1, %s1586_s20 }
   0xe   : > { %s29_s26 = ssub.s32 %s1590_s21, %s1659_s24  ;;  %p39_p0 = scmp.ne.s32.totalorder %s1586_s20, %s1582_s19 }
   0xf   : > { %p30_p1 = scmp.eq.s32.totalorder %s29_s26, 0  ;;  %p40_p2 = scmp.eq.s32.totalorder %s1590_s21, 0 }
  0x10   : > { %p45_p3 = scmp.ne.s32.totalorder %s1582_s19, %s1578_s18  ;;  %p2206_p4 = scmp.eq.s32.totalorder %s1655_s22, 0 }
  0x11   : > { %s1671_s27 = scalar_select %p30_p1, %s1586_s20, %s32_s25  }
  0x12   : > { %p1673_p5 = por %p40_p2, %p39_p0  ;;  %p1679_p6 = por %p2206_p4, %p45_p3 }
  0x13   : > { %2225 = sst [smem:[#allocation18_spill]] %s1671_s27  ;;  %p163_p7 = scmp.eq.s32.totalorder %s1655_s22, 1 }
  0x14   : > { %s2227_s29 = scalar_select %p1679_p6, 1, 0 }
  0x15   : > { %p169_p8 = scmp.eq.s32.totalorder %s1054_s23, 1  ;;  %p1055_p9 = scmp.ge.s32.totalorder %s1590_s21, 1 }
  0x16   : > { %p176_p10 = scmp.lt.s32.totalorder %s1590_s21, 3  ;;  %p1686_p11 = por %p163_p7, %p39_p0 }
  0x17   : > { %p1690_p12 = por %p169_p8, %p45_p3  ;;  %s1592_s8 = smov [#allocation8]  }
  0x18   : > { %s2228_s30 = scalar_select %p1686_p11, 1, 0 }
  0x19   : > { %s2229_s6 = scalar_select %p1690_p12, 1, 0 }
  0x1a   : > { %p1694_p13 = pnand %p1055_p9, %p176_p10  ;;  %s188_s9 = sshll.u32 %s1592_s8, 4  ;;  %s189_s9 = int_to_ptr.vmem [resolvable:$true] %s188_s9 }
  0x1b   : > { %p1304_p3 = scmp.lt.s32.totalorder %s1590_s21, 2  ;;  %s1709_s11 = sand.u32 1, %s1586_s20  }
  0x1c   : > { %s2230_s7 = scalar_select %p1694_p13, 1, 0 }
  0x1d   : > { %p1281_p1 = pneg %p1694_p13  ;;  %s237_s12 = sand.u32 1, %s1590_s21  }
  0x1e   : > { %s1393_s13 = scalar_lea.vmem %s189_s9, 256  ;;  %p1401_p12 = scmp.lt.s32.totalorder %s189_s9, %s189_s9 }
  0x1f   : > { %p1702_p2 = pnand %p1281_p1, %p2206_p4  ;;  %p1394_p8 = scmp.ne.s32.totalorder %s189_s9, %s1393_s13 }
  0x20   : > { %p1402_p1 = scmp.lt.s32.totalorder %s1393_s13, %s1393_s13 }
  0x21   : > { %s2231_s10 = scalar_select %p1702_p2, 1, 0 }
  0x22   : > { %p2215_p7 = pneg %p1702_p2  ;;  %p1403_p4 = por %p1402_p1, %p1401_p12 }
  0x24   : > { %p1396_p9 = pnand %p1394_p8, %p2215_p7 }
  0x26   : > { %p1397_p10 = pneg %p1396_p9 }
  0x28   : > { %p1404_p11 = pnand %p1403_p4, %p1397_p10 }
  0x2a   : > { %1407 = shalt.err (!%p1404_p11)
}
  0x2b   : > { %s2213_s14 = smov 64   ;;  %s2220_s15 = smov 4  }
  0x2c   : > { %1284 = dma.hbm_to_vmem [thread:$0]  (!%p1702_p2), %s2203_s3, 256, %s189_s9, [#allocation9], %s2213_s14, %s2213_s14, %s2220_s15  }
  0x2d   : > { %p1729_p4 = pnand %p1304_p3, %p1673_p5  ;;  %s2211_s25 = smul.u32 48, %s1709_s11 }
  0x2e   : > { %s2212_s26 = smul.u32 768, %s1590_s21  ;;  %s1595_s8 = smov [#allocation10]  }
  0x2f   : > { %s201_s13 = sshll.u32 %s1595_s8, 4  ;;  %s2233_s1 = sld [smem:[#allocation20_spill]]  ;;  %s1746_s13 = int_to_ptr.vmem [resolvable:$true] %s201_s13 }
  0x30   : > { %s241_s28 = scalar_lea.vmem [#allocation5], %s2211_s25  ;;  %s1748_s16 = scalar_lea.sflag [#allocation6], %s237_s12 }
  0x31   : > { %s249_s9 = sshll.u32 %s241_s28, 4  ;;  %p1754_p11 = pneg %p1729_p4  ;;  %s1744_s9 = int_to_ptr.vmem [resolvable:$true] %s249_s9 }
  0x35   : > { %s1740_s24 = scalar_lea.hbm %s2233_s1, %s2212_s26  ;;  %s1413_s28 = scalar_lea.hbm %s2233_s1, 1536 }
  0x36   : > { %s1408_s17 = scalar_lea.hbm %s1740_s24, 768  ;;  %p1414_p8 = scmp.lt.s32.totalorder %s1740_s24, %s2233_s1 }
  0x37   : > { %p1409_p5 = scmp.ne.s32.totalorder %s1740_s24, %s1408_s17  ;;  %p1415_p9 = scmp.lt.s32.totalorder %s1413_s28, %s1408_s17 }
  0x39   : > { %p1411_p12 = pnand %p1754_p11, %p1409_p5  ;;  %p1416_p10 = por %p1415_p9, %p1414_p8 }
  0x3b   : > { %p1412_p3 = pneg %p1411_p12 }
  0x3d   : > { %p1417_p1 = pnand %p1416_p10, %p1412_p3 }
  0x3f   : > { %1420 = shalt.err (!%p1417_p1)
}
  0x40   : > { %s1421_s12 = scalar_lea.vmem %s1744_s9, 768  ;;  %s1596_s14 = smov [#allocation5]  }
  0x41   : > { %p1422_p0 = scmp.ne.s32.totalorder %s1744_s9, %s1421_s12  ;;  %s1426_s20 = sshll.u32 %s1596_s14, 4  ;;  %s1427_s20 = int_to_ptr.vmem [resolvable:$false] %s1426_s20 }
  0x42   : > { %s1428_s27 = scalar_lea.vmem %s1427_s20, 1536  ;;  %p1429_p7 = scmp.lt.s32.totalorder %s1744_s9, %s1427_s20 }
  0x43   : > { %p1424_p5 = pnand %p1422_p0, %p1754_p11  ;;  %p1430_p6 = scmp.lt.s32.totalorder %s1428_s27, %s1421_s12 }
  0x45   : > { %p1425_p12 = pneg %p1424_p5  ;;  %p1431_p13 = por %p1430_p6, %p1429_p7 }
  0x47   : > { %p1432_p2 = pnand %p1431_p13, %p1425_p12 }
  0x49   : > { %1435 = shalt.err (!%p1432_p2)
}
  0x4a   : > { %s2235_s25 = smov 64   ;;  %s1447_s14 = scalar_lea.vmem %s1746_s13, 1024 }
  0x4b   : > { %1294 = dma.hbm_to_vmem [thread:$0]  (!%p1729_p4), %s1740_s24, 768, %s1744_s9, %s1748_s16, %s2235_s25, %s2235_s25, %s2220_s15  }
  0x4c   : > { %p1448_p0 = scmp.ne.s32.totalorder %s1746_s13, %s1447_s14  ;;  %p2236_p3 = scmp.ne.s32.totalorder %s2231_s10, 0 }
  0x4d   : > { %p1455_p2 = scmp.lt.s32.totalorder %s1746_s13, %s1746_s13  ;;  %p1456_p7 = scmp.lt.s32.totalorder %s1447_s14, %s1447_s14 }
  0x4e   : > { %p2237_p8 = pneg %p2236_p3 }
  0x4f   : > { %p1457_p9 = por %p1456_p7, %p1455_p2 }
  0x50   : > { %p1450_p6 = pnand %p1448_p0, %p2237_p8 }
  0x52   : > { %p1451_p13 = pneg %p1450_p6 }
  0x54   : > { %p1458_p10 = pnand %p1457_p9, %p1451_p13 }
  0x56   : > { %1461 = shalt.err (!%p1458_p10)
}
  0x57   : > { %1287 = dma.hbm_to_vmem [thread:$0]  (!%p2236_p3), %s2204_s4, 1024, %s1746_s13, [#allocation9], %s2235_s25, %s2235_s25, %s2220_s15  }
  0x58   : > { %s1260_s9 = smul.u32 96, %s1709_s11  ;;  %s2238_s0 = sld [smem:[#allocation19_spill]] }
  0x59   : > { %s1168_s17 = smul.u32 1536, %s1590_s21  ;;  %s216_s14 = scalar_lea.sflag [#allocation3], %s1709_s11 }
  0x5a   : > { %s219_s10 = scalar_lea.vmem [#allocation2], %s1260_s9 }
  0x5b   : > { %s227_s27 = sshll.u32 %s219_s10, 4  ;;  %s1803_s27 = int_to_ptr.vmem [resolvable:$true] %s227_s27 }
  0x5e   : > { %s1801_s20 = scalar_lea.hbm %s2238_s0, %s1168_s17  ;;  %s1467_s15 = scalar_lea.hbm %s2238_s0, 3072 }
  0x5f   : > { %s1462_s26 = scalar_lea.hbm %s1801_s20, 1536  ;;  %p1468_p0 = scmp.lt.s32.totalorder %s1801_s20, %s2238_s0 }
  0x60   : > { %p1463_p1 = scmp.ne.s32.totalorder %s1801_s20, %s1462_s26  ;;  %p1469_p3 = scmp.lt.s32.totalorder %s1467_s15, %s1462_s26 }
  0x62   : > { %p1465_p5 = pnand %p1463_p1, %p1754_p11  ;;  %p1470_p8 = por %p1469_p3, %p1468_p0 }
  0x64   : > { %p1466_p12 = pneg %p1465_p5 }
  0x66   : > { %p1471_p6 = pnand %p1470_p8, %p1466_p12 }
  0x68   : > { %1474 = shalt.err (!%p1471_p6)
}
  0x69   : > { %s1475_s9 = scalar_lea.vmem %s1803_s27, 1536  ;;  %s1597_s12 = smov [#allocation2]  }
  0x6a   : > { %p1476_p13 = scmp.ne.s32.totalorder %s1803_s27, %s1475_s9  ;;  %s1480_s10 = sshll.u32 %s1597_s12, 4  ;;  %s1481_s10 = int_to_ptr.vmem [resolvable:$false] %s1480_s10 }
  0x6b   : > { %s1482_s13 = scalar_lea.vmem %s1481_s10, 3072  ;;  %p1483_p9 = scmp.lt.s32.totalorder %s1803_s27, %s1481_s10 }
  0x6c   : > { %p1478_p2 = pnand %p1476_p13, %p1754_p11  ;;  %p1484_p10 = scmp.lt.s32.totalorder %s1482_s13, %s1475_s9 }
  0x6e   : > { %p1479_p7 = pneg %p1478_p2  ;;  %p1485_p1 = por %p1484_p10, %p1483_p9 }
  0x70   : > { %p1486_p5 = pnand %p1485_p1, %p1479_p7 }
  0x72   : > { %1489 = shalt.err (!%p1486_p5)
}
  0x73   : > { %s1598_s15 = smov 128   ;;  %s1599_s26 = smov 8  }
  0x74   : > { %1291 = dma.hbm_to_vmem [thread:$0]  (!%p1729_p4), %s1801_s20, 1536, %s1803_s27, %s216_s14, %s1598_s15, %s1598_s15, %s1599_s26  }
  0x75   : > { %s2239_s24 = smul.u32 768, %s1590_s21  ;;  %s1495_s27 = scalar_lea.hbm %s2202_s2, 1536 }
  0x76   : > { %s2240_s12 = smul.u32 48, %s1709_s11 }
  0x77   : > { %s1833_s9 = scalar_lea.hbm %s2202_s2, %s2239_s24 }
  0x78   : > { %s263_s10 = scalar_lea.vmem [#allocation7], %s2240_s12  ;;  %s1490_s0 = scalar_lea.hbm %s1833_s9, 768 }
  0x79   : > { %s271_s13 = sshll.u32 %s263_s10, 4  ;;  %p1491_p12 = scmp.ne.s32.totalorder %s1833_s9, %s1490_s0  ;;  %s272_s13 = int_to_ptr.vmem [resolvable:$true] %s271_s13 }
  0x7a   : > { %p1496_p8 = scmp.lt.s32.totalorder %s1833_s9, %s2202_s2  ;;  %p1497_p6 = scmp.lt.s32.totalorder %s1495_s27, %s1490_s0 }
  0x7b   : > { %p1493_p0 = pnand %p1491_p12, %p1754_p11 }
  0x7c   : > { %p1498_p13 = por %p1497_p6, %p1496_p8 }
  0x7d   : > { %p1494_p3 = pneg %p1493_p0 }
  0x7f   : > { %p1499_p2 = pnand %p1498_p13, %p1494_p3 }
  0x81   : > { %1502 = shalt.err (!%p1499_p2)
}
  0x82   : > { %s1503_s11 = scalar_lea.vmem %s272_s13, 768  ;;  %s1600_s26 = smov [#allocation7]  }
  0x83   : > { %p1504_p7 = scmp.ne.s32.totalorder %s272_s13, %s1503_s11  ;;  %s1508_s24 = sshll.u32 %s1600_s26, 4  ;;  %s1509_s24 = int_to_ptr.vmem [resolvable:$false] %s1508_s24 }
  0x84   : > { %s1510_s28 = scalar_lea.vmem %s1509_s24, 1536  ;;  %p1511_p1 = scmp.lt.s32.totalorder %s272_s13, %s1509_s24 }
  0x85   : > { %p1506_p9 = pnand %p1504_p7, %p1754_p11  ;;  %p1512_p5 = scmp.lt.s32.totalorder %s1510_s28, %s1503_s11 }
  0x87   : > { %p1507_p10 = pneg %p1506_p9  ;;  %p1513_p12 = por %p1512_p5, %p1511_p1 }
  0x89   : > { %p1514_p0 = pnand %p1513_p12, %p1507_p10 }
  0x8b   : > { %1517 = shalt.err (!%p1514_p0)
}
  0x8c   : > { %s2241_s0 = smov 4   ;;  %p2242_p11 = scmp.ne.s32.totalorder %s2230_s7, 0 }
  0x8d   : > { %1297 = dma.hbm_to_vmem [thread:$0]  (!%p1729_p4), %s1833_s9, 768, %s272_s13, %s1748_s16, %s2235_s25, %s2235_s25, %s2241_s0  }
  0x8e   : > { %283 = sbr.rel (%p2242_p11) target bundleno = 659 (0x293), region = 40  ;;  %s1860_s1 = sand.u32 (!%p2242_p11), 1, %s1582_s19  }
  0x8f   : > { %s1263_s8 = smul.u32 (!%p2242_p11), 96, %s1860_s1  ;;  %s286_s17 = scalar_lea.sflag (!%p2242_p11), [#allocation3], %s1860_s1 }
  0x90   : > { %p2243_p3 = scmp.ne.s32.totalorder (!%p2242_p11), %s2227_s29, 0 }
  0x91   : > { %s1866_s23 = scalar_lea.vmem (!%p2242_p11), [#allocation2], %s1263_s8 }
  0x93   : > { %1561 = dma.done.wait (%p2243_p3), %s286_s17, 1536  }
  0x94   : > { %1563 = vsyncadd (%p2243_p3), %s286_s17, 4294965760  ;;  %s294_s7 = sand.u32 1, %s1655_s22   ;;  %s1264_s16 = smul.u32 48, %s1860_s1 }
  0x95   : > { %s295_s25 = scalar_lea.sflag [#allocation6], %s294_s7 }
  0x96   : > { %s1874_s9 = scalar_lea.vmem [#allocation5], %s1264_s16 }
  0x97   : > { %1565 = dma.done.wait (%p2243_p3), %s295_s25, 1536  }
  0x98   : > { %1567 = vsyncadd (%p2243_p3), %s295_s25, 4294965760  ;;  %s1880_s12 = scalar_lea.vmem [#allocation7], %s1264_s16  ;;  %p2244_p4 = scmp.eq.s32.totalorder %s1655_s22, 0 }
  0x9a   : > { %1569 = dma.done.wait (%p2244_p4), [#allocation9], 1280   ;;  %p2245_p8 = pmov %p2244_p4 }
  0x9b   : > { %v1348_v0 = vld [vmem:[#allocation10 + $0x38] sm:$0xff]   ;;  %v1349_v1 = vld [vmem:[#allocation10 + $0x30] sm:$0xff]   ;;  %v1350_v2 = vld [vmem:[#allocation10 + $0x28] sm:$0xff]   ;;  %vm548_vm0 = vcmask 261120   ;;  %s2062_s29 = scalar_lea.vmem [#allocation11], %s1263_s8  ;;  %s1181_s10 = smul.u32 1536, %s1655_s22 }
  0x9c   : > { %1571 = vsyncadd (%p2245_p8), [#allocation9], 4294966016  ;;  %1208 = vmatprep.subr.bf16.mxu0 %v1348_v0  ;;  %v1351_v3 = vld [vmem:[#allocation10 + $0x20] sm:$0xff]   ;;  %v357_v4 = vld [vmem:[%s1866_s23] sm:$0xff]  ;;  %s919_s13 = sshll.u32 %s2062_s29, 4  ;;  %s905_s15 = scalar_lea.sflag [#allocation4], %s1860_s1  ;;  %s2156_s13 = int_to_ptr.vmem [resolvable:$true] %s919_s13 }
  0x9d   : > { %1209 = vmatpush3.bf16.msra.mxu0 %v1348_v0  ;;  %v358_v5 = vld [vmem:[%s1866_s23 + $0x8] sm:$0xff]  ;;  %v1353_v8 = vld [vmem:[#allocation10 + $0x10] sm:$0xff]   ;;  %v1354_v9 = vld [vmem:[#allocation10 + $0x8] sm:$0xff]   ;;  %s2154_s14 = scalar_lea.hbm %s2205_s5, %s1181_s10  ;;  %s1518_s11 = scalar_lea.vmem %s2156_s13, 1536 }
  0x9e   : > { %1210 = vmatprep.subr.bf16.mxu0 %v1349_v1  ;;  %v369_v6 = vpack.c.bf16 %v358_v5, %v357_v4  ;;  %v1352_v7 = vld [vmem:[#allocation10 + $0x18] sm:$0xff]   ;;  %v1355_v10 = vld [vmem:[#allocation10] sm:$0xff]   ;;  %v360_v12 = vld [vmem:[%s1866_s23 + $0x18] sm:$0xff]  ;;  %p1519_p6 = scmp.ne.s32.totalorder %s2156_s13, %s1518_s11  ;;  %p2246_p13 = scmp.ne.s32.totalorder %s2228_s30, 0 }
  0x9f   : > { %v359_v11 = vld [vmem:[%s1866_s23 + $0x10] sm:$0xff]  ;;  %v361_v13 = vld [vmem:[%s1866_s23 + $0x20] sm:$0xff]  ;;  %v362_v14 = vld [vmem:[%s1866_s23 + $0x28] sm:$0xff]  ;;  %s1601_s22 = smov [#allocation11]  }
  0xa0   : > { %1224 = vmatprep.mubr.bf16.mxu0 %v369_v6  ;;  %v370_v15 = vpack.c.bf16 %v360_v12, %v359_v11  ;;  %v371_v16 = vpack.c.bf16 %v362_v14, %v361_v13  ;;  %v363_v17 = vld [vmem:[%s1866_s23 + $0x30] sm:$0xff]  ;;  %v364_v18 = vld [vmem:[%s1866_s23 + $0x38] sm:$0xff]  ;;  %v365_v19 = vld [vmem:[%s1866_s23 + $0x40] sm:$0xff]  ;;  %p1520_p2 = pnand %p1519_p6, %p2246_p13  ;;  %s1522_s26 = sshll.u32 %s1601_s22, 4  ;;  %s1523_s26 = int_to_ptr.vmem [resolvable:$false] %s1522_s26 }
  0xa1   : > { %1211 = vmatpush3.bf16.msra.mxu0 %v1349_v1  ;;  %v366_v20 = vld [vmem:[%s1866_s23 + $0x48] sm:$0xff]  ;;  %v372_v21 = vpack.c.bf16 %v364_v18, %v363_v17  ;;  %v367_v23 = vld [vmem:[%s1866_s23 + $0x50] sm:$0xff]  ;;  %v368_v24 = vld [vmem:[%s1866_s23 + $0x58] sm:$0xff]  ;;  %s1524_s24 = scalar_lea.vmem %s1523_s26, 3072  ;;  %p1525_p9 = scmp.lt.s32.totalorder %s2156_s13, %s1523_s26 }
  0xa2   : > { %1212 = vmatprep.subr.bf16.mxu0 %v1350_v2  ;;  %v373_v22 = vpack.c.bf16 %v366_v20, %v365_v19  ;;  %v374_v25 = vpack.c.bf16 %v368_v24, %v367_v23  ;;  %v1356_v26 = vld [vmem:[#allocation8] sm:$0xff]   ;;  %v1357_v35 = vld [vmem:[#allocation8 + $0x8] sm:$0xff]   ;;  %p1521_p7 = pneg %p1520_p2  ;;  %p1526_p10 = scmp.lt.s32.totalorder %s1524_s24, %s1518_s11 }
  0xa3   : > { %1240 = vmatprep.mubr.msk.bf16.mxu1 %vm548_vm0, %v1356_v26  ;;  %v1171_v46 = vld [vmem:[%s1874_s9 + $0x8] sm:$0xff]   ;;  %v1121_v47 = vld [vmem:[%s1874_s9] sm:$0xff]   ;;  %v1174_v54 = vld [vmem:[%s1874_s9 + $0x18] sm:$0xff]  }
  0xa4   : > { %v1126_v48 = vunpack.c.l.bf16 %v1171_v46  ;;  %v1122_v49 = vunpack.c.l.bf16 %v1121_v47  ;;  %v1127_v53 = vunpack.c.h.bf16 %v1171_v46  ;;  %v1123_v57 = vunpack.c.h.bf16 %v1121_v47  ;;  %v1173_v60 = vld [vmem:[%s1874_s9 + $0x10] sm:$0xff]   ;;  %v1924_v1 = vld [vmem:[%s1880_s12 + $0x8] sm:$0xff]   ;;  %v1946_v13 = vld [vmem:[%s1880_s12 + $0x18] sm:$0xff]   ;;  %p1527_p1 = por %p1526_p10, %p1525_p9 }
  0xa5   : > { %1213 = vmatpush3.bf16.msra.mxu0 %v1350_v2  ;;  %v1142_v59 = vunpack.c.l.bf16 %v1174_v54  ;;  %v1134_v12 = vunpack.c.l.bf16 %v1924_v1  ;;  %v1949_v14 = vld [vmem:[%s1880_s12 + $0x10] sm:$0xff]   ;;  %v1135_v23 = vunpack.c.h.bf16 %v1924_v1 }
  0xa6   : > { %1214 = vmatprep.subr.bf16.mxu0 %v1351_v3  ;;  %p1528_p5 = pnand %p1527_p1, %p1521_p7 }
  0xa9   : > { %1215 = vmatpush3.bf16.msra.mxu0 %v1351_v3  ;;  %v1138_v3 = vunpack.c.l.bf16 %v1173_v60 }
  0xaa   : > { %1216 = vmatprep.subr.bf16.mxu0 %v1352_v7 }
  0xad   : > { %1217 = vmatpush3.bf16.msra.mxu0 %v1352_v7  ;;  %v1143_v7 = vunpack.c.h.bf16 %v1174_v54 }
  0xae   : > { %1218 = vmatprep.subr.bf16.mxu0 %v1353_v8 }
  0xb1   : > { %1219 = vmatpush3.bf16.msra.mxu0 %v1353_v8  ;;  %v1178_v8 = vld [vmem:[%s1874_s9 + $0x28] sm:$0xff]  }
  0xb2   : > { %1220 = vmatprep.subr.bf16.mxu0 %v1354_v9  ;;  %v1158_v17 = vunpack.c.l.bf16 %v1178_v8 }
  0xb5   : > { %1221 = vmatpush3.bf16.msra.mxu0 %v1354_v9  ;;  %v1937_v9 = vld [vmem:[%s1874_s9 + $0x20] sm:$0xff]  }
  0xb6   : > { %1222 = vmatprep.subr.bf16.mxu0 %v1355_v10  ;;  %v1154_v18 = vunpack.c.l.bf16 %v1937_v9 }
  0xb9   : > { %1223 = vmatpush3.bf16.msra.mxu0 %v1355_v10  ;;  %v1940_v10 = vld [vmem:[%s1880_s12] sm:$0xff]  }
  0xba   : > { %v1130_v19 = vunpack.c.l.bf16 %v1940_v10  ;;  %v1131_v24 = vunpack.c.h.bf16 %v1940_v10 }
  0xbc   : > { %1225 = vmatmul.mubr.bf16.vlgmr.msra.gmra.mxu0 %v370_v15 }
  0xbd   : > { %1228 = vmatprep.mubr.bf16.mxu0 %v371_v16  ;;  %v1139_v16 = vunpack.c.h.bf16 %v1173_v60 }
  0xc4   : > { %1229 = vmatmul.mubr.bf16.gmra.mxu0 %v372_v21 }
  0xc5   : > { %1232 = vmatprep.mubr.bf16.mxu0 %v373_v22 }
  0xcc   : > { %1233 = vmatmul.mubr.bf16.gmra.mxu0 %v374_v25 }
 0x17c   : > { %v1226_v27 = vpop.f32.mrf.mxu0 }
 0x17e   : > { %v473_v28 = vpop.f32.mrf.mxu0 }
 0x180   : > { %v1227_v29 = vpop.f32.mrf.mxu0 }
 0x181   : > { %v521_v30 = vpack.c.bf16 %v1227_v29, %v1226_v27  ;;  %v1159_v27 = vunpack.c.h.bf16 %v1178_v8  ;;  %v1150_v29 = vunpack.c.l.bf16 %v1946_v13 }
 0x182   : > { %v476_v31 = vpop.f32.mrf.mxu0 }
 0x183   : > { %v520_v32 = vpack.c.bf16 %v476_v31, %v473_v28  ;;  %1236 = vmatprep.subr.bf16.mxu1 %v521_v30  ;;  %v1155_v28 = vunpack.c.h.bf16 %v1937_v9  ;;  %v1151_v31 = vunpack.c.h.bf16 %v1946_v13 }
 0x184   : > { %v1230_v33 = vpop.f32.mrf.mxu0  ;;  %1237 = vmatpush3.bf16.msra.mxu1 %v521_v30  ;;  %v1146_v30 = vunpack.c.l.bf16 %v1949_v14 }
 0x185   : > { %1238 = vmatprep.subr.bf16.mxu1 %v520_v32 }
 0x186   : > { %v489_v34 = vpop.f32.mrf.mxu0 }
 0x188   : > { %v1231_v36 = vpop.f32.mrf.mxu0  ;;  %1239 = vmatpush3.bf16.msra.mxu1 %v520_v32 }
 0x189   : > { %v523_v37 = vpack.c.bf16 %v1231_v36, %v1230_v33 }
 0x18a   : > { %v492_v38 = vpop.f32.mrf.mxu0 }
 0x18b   : > { %v522_v39 = vpack.c.bf16 %v492_v38, %v489_v34  ;;  %1241 = vmatmul.mubr.msk.bf16.vlgmr.msra.gmra.mxu1 %vm548_vm0, %v1357_v35  ;;  %1244 = vmatprep.subr.bf16.mxu1 %v523_v37 }
 0x18c   : > { %v1234_v40 = vpop.f32.mrf.mxu0  ;;  %1245 = vmatpush3.bf16.msra.mxu1 %v523_v37  ;;  %1248 = vmatprep.mubr.msk.bf16.mxu1 %vm548_vm0, %v1356_v26 }
 0x18d   : > { %1246 = vmatprep.subr.bf16.mxu1 %v522_v39 }
 0x18e   : > { %v505_v41 = vpop.f32.mrf.mxu0 }
 0x190   : > { %v1235_v42 = vpop.f32.mrf.mxu0  ;;  %1247 = vmatpush3.bf16.msra.mxu1 %v522_v39 }
 0x191   : > { %v525_v43 = vpack.c.bf16 %v1235_v42, %v1234_v40 }
 0x192   : > { %v508_v44 = vpop.f32.mrf.mxu0 }
 0x193   : > { %v524_v45 = vpack.c.bf16 %v508_v44, %v505_v41  ;;  %1249 = vmatmul.mubr.msk.bf16.vlgmr.msra.gmra.mxu1 %vm548_vm0, %v1357_v35  ;;  %1252 = vmatprep.subr.bf16.mxu1 %v525_v43 }
 0x194   : > { %1253 = vmatpush3.bf16.msra.mxu1 %v525_v43  ;;  %1256 = vmatprep.mubr.msk.bf16.mxu1 %vm548_vm0, %v1356_v26  ;;  %v1963_v26 = vld [vmem:[%s1880_s12 + $0x28] sm:$0xff]  }
 0x195   : > { %1254 = vmatprep.subr.bf16.mxu1 %v524_v45  ;;  %v1166_v38 = vunpack.c.l.bf16 %v1963_v26 }
 0x198   : > { %1255 = vmatpush3.bf16.msra.mxu1 %v524_v45 }
 0x19b   : > { %1257 = vmatmul.mubr.msk.bf16.vlgmr.msra.gmra.mxu1 %vm548_vm0, %v1357_v35  ;;  %v1147_v35 = vunpack.c.h.bf16 %v1949_v14 }
 0x24b   : > { %v1242_v50 = vpop.f32.mrf.mxu1 }
 0x24c   : > { %v1906_v51 = vadd.f32 %v1242_v50, %v1126_v48 }
 0x24d   : > { %v589_v52 = vpop.f32.mrf.mxu1 }
 0x24e   : > { %v1910_v55 = vmax.f32 %v1906_v51, 0.0  ;;  %v1912_v56 = vadd.f32 %v1122_v49, %v589_v52 }
 0x24f   : > { %v1243_v58 = vpop.f32.mrf.mxu1 }
 0x250   : > { %1358 = vrsqrt.f32 %v1910_v55  ;;  %v1917_v61 = vmax.f32 %v1912_v56, 0.0  ;;  %v1919_v62 = vadd.f32 %v1243_v58, %v1127_v53  ;;  %vm632_vm1 = vcmp.eq.f32.partialorder %v1910_v55, inf }
 0x251   : > { %v592_v63 = vpop.f32.mrf.mxu1  ;;  %vm634_vm2 = vcmp.eq.f32.partialorder %v1910_v55, 0.0  ;;  %v635_v40 = vand.u32 2147483648, %v1910_v55 }
 0x252   : > { %v1921_v0 = vadd.f32 %v1123_v57, %v592_v63  ;;  %1360 = vrsqrt.f32 %v1917_v61  ;;  %v1928_v4 = vmax.f32 %v1919_v62, 0.0  ;;  %vm618_vm3 = vcmp.eq.f32.partialorder %v1917_v61, inf }
 0x253   : > { %v1250_v2 = vpop.f32.mrf.mxu1  ;;  %vm620_vm4 = vcmp.eq.f32.partialorder %v1917_v61, 0.0  ;;  %v621_v43 = vand.u32 2147483648, %v1917_v61 }
 0x254   : > { %v1931_v5 = vmax.f32 %v1921_v0, 0.0  ;;  %v1933_v6 = vadd.f32 %v1250_v2, %v1142_v59  ;;  %1362 = vrsqrt.f32 %v1928_v4  ;;  %vm639_vm5 = vcmp.eq.f32.partialorder %v1928_v4, inf }
 0x255   : > { %v707_v11 = vpop.f32.mrf.mxu1  ;;  %vm641_vm6 = vcmp.eq.f32.partialorder %v1928_v4, 0.0  ;;  %v642_v44 = vand.u32 2147483648, %v1928_v4 }
 0x256   : > { %1364 = vrsqrt.f32 %v1931_v5  ;;  %v1954_v20 = vmax.f32 %v1933_v6, 0.0  ;;  %v1956_v21 = vadd.f32 %v1138_v3, %v707_v11  ;;  %vm625_vm7 = vcmp.eq.f32.partialorder %v1931_v5, inf }
 0x257   : > { %v1251_v15 = vpop.f32.mrf.mxu1  ;;  %vm627_vm8 = vcmp.eq.f32.partialorder %v1931_v5, 0.0  ;;  %v628_v58 = vand.u32 2147483648, %v1931_v5 }
 0x258   : > { %v1958_v22 = vadd.f32 %v1251_v15, %v1143_v7  ;;  %1366 = vrsqrt.f32 %v1954_v20  ;;  %v1971_v32 = vmax.f32 %v1956_v21, 0.0  ;;  %vm751_vm9 = vcmp.eq.f32.partialorder %v1954_v20, inf }
 0x259   : > { %v710_v25 = vpop.f32.mrf.mxu1  ;;  %vm753_vm10 = vcmp.eq.f32.partialorder %v1954_v20, 0.0 }
 0x25a   : > { %v1974_v33 = vmax.f32 %v1958_v22, 0.0  ;;  %v1976_v34 = vadd.f32 %v1139_v16, %v710_v25  ;;  %1368 = vrsqrt.f32 %v1971_v32  ;;  %v740_v63 = vand.u32 2147483648, %v1971_v32 }
 0x25b   : > { %v1258_v36 = vpop.f32.mrf.mxu1  ;;  %vm737_vm11 = vcmp.eq.f32.partialorder %v1971_v32, inf  ;;  %vm739_vm12 = vcmp.eq.f32.partialorder %v1971_v32, 0.0 }
 0x25c   : > { %v1981_v37 = vadd.f32 %v1258_v36, %v1158_v17  ;;  %1370 = vrsqrt.f32 %v1974_v33  ;;  %v1995_v45 = vmax.f32 %v1976_v34, 0.0  ;;  %vm758_vm13 = vcmp.eq.f32.partialorder %v1974_v33, inf }
 0x25d   : > { %v1359_v39 = vpop.eup %1358  ;;  %v827_v41 = vpop.f32.mrf.mxu1  ;;  %vm760_vm14 = vcmp.eq.f32.partialorder %v1974_v33, 0.0  ;;  %v761_v36 = vand.u32 2147483648, %v1974_v33 }
 0x25e   : > { %v631_v42 = vmul.f32 %v1359_v39, %v1910_v55  ;;  %v1998_v46 = vmax.f32 %v1981_v37, 0.0  ;;  %v2005_v50 = vadd.f32 %v1154_v18, %v827_v41  ;;  %1372 = vrsqrt.f32 %v1995_v45 }
 0x25f   : > { %v1259_v47 = vpop.f32.mrf.mxu1  ;;  %v1361_v48 = vpop.eup %1360  ;;  %vm744_vm15 = vcmp.eq.f32.partialorder %v1995_v45, inf  ;;  %vm746_vm0 = vcmp.eq.f32.partialorder %v1995_v45, 0.0 }
 0x260   : > { %v633_v49 = vsel %vm632_vm1, %v1910_v55, %v631_v42  ;;  %v617_v53 = vmul.f32 %v1361_v48, %v1917_v61  ;;  %v2011_v54 = vadd.f32 %v1259_v47, %v1159_v27  ;;  %1374 = vrsqrt.f32 %v1998_v46 }
 0x261   : > { %v636_v52 = vsel %vm634_vm2, %v635_v40, %v633_v49  ;;  %v1363_v59 = vpop.eup %1362  ;;  %v754_v55 = vand.u32 2147483648, %v1954_v20  ;;  %v2028_v11 = vmax.f32 %v2005_v50, 0.0  ;;  %v830_v17 = vpop.f32.mrf.mxu1  ;;  %v747_v49 = vand.u32 2147483648, %v1995_v45 }
 0x262   : > { %v646_v57 = vmul.f32 %v1134_v12, %v636_v52  ;;  %v619_v60 = vsel %vm618_vm3, %v1917_v61, %v617_v53  ;;  %v638_v8 = vmul.f32 %v1363_v59, %v1928_v4  ;;  %v2034_v16 = vmax.f32 %v2011_v54, 0.0 }
 0x263   : > { %v1365_v2 = vpop.eup %1364  ;;  %v622_v7 = vsel %vm620_vm4, %v621_v43, %v619_v60  ;;  %1376 = vrsqrt.f32 %v2028_v11  ;;  %vm871_vm1 = vcmp.eq.f32.partialorder %v1998_v46, inf  ;;  %vm873_vm2 = vcmp.eq.f32.partialorder %v1998_v46, 0.0 }
 0x264   : > { %v650_v3 = vadd.f32 %v646_v57, %v1906_v51  ;;  %v644_v12 = vmul.f32 %v1130_v19, %v622_v7  ;;  %v624_v15 = vmul.f32 %v1365_v2, %v1931_v5  ;;  %v640_v61 = vsel %vm639_vm5, %v1928_v4, %v638_v8 }
 0x265   : > { %v1367_v18 = vpop.eup %1366  ;;  %v643_v25 = vsel %vm641_vm6, %v642_v44, %v640_v61  ;;  %1378 = vrsqrt.f32 %v2034_v16  ;;  %v2058_v4 = vadd.f32 %v1155_v28, %v830_v17  ;;  %vm857_vm3 = vcmp.eq.f32.partialorder %v2028_v11, inf }
 0x266   : > { %v654_v51 = vmax.f32 %v650_v3, 0.0  ;;  %v648_v19 = vadd.f32 %v644_v12, %v1912_v56  ;;  %v626_v27 = vsel %vm625_vm7, %v1931_v5, %v624_v15  ;;  %v647_v40 = vmul.f32 %v1135_v23, %v643_v25  ;;  %v1179_v12 = vld [vmem:[%s1880_s12 + $0x20] sm:$0xff]  }
 0x267   : > { %v629_v41 = vsel %vm627_vm8, %v628_v58, %v626_v27  ;;  %v750_v42 = vmul.f32 %v1367_v18, %v1954_v20  ;;  %v1369_v44 = vpop.eup %1368  ;;  %vm859_vm4 = vcmp.eq.f32.partialorder %v2028_v11, 0.0  ;;  %vm878_vm5 = vcmp.eq.f32.partialorder %v2034_v16, inf }
 0x268   : > { %v658_v39 = vmin.f32 %v654_v51, 1.0  ;;  %v652_v43 = vmax.f32 %v648_v19, 0.0  ;;  %v645_v56 = vmul.f32 %v1131_v24, %v629_v41  ;;  %v651_v1 = vadd.f32 %v647_v40, %v1919_v62 }
 0x269   : > { %v752_v5 = vsel %vm751_vm9, %v1954_v20, %v750_v42  ;;  %v1371_v9 = vpop.eup %1370  ;;  %v736_v28 = vmul.f32 %v1369_v44, %v1971_v32  ;;  %v2085_v20 = vmax.f32 %v2058_v4, 0.0  ;;  %v1167_v42 = vunpack.c.h.bf16 %v1963_v26 }
 0x26a   : > { %662 = vst [vmem:[%s2062_s29 + $0x10] sm:$0xff] %v658_v39  ;;  %v656_v10 = vmin.f32 %v652_v43, 1.0  ;;  %v649_v23 = vadd.f32 %v645_v56, %v1921_v0  ;;  %v755_v24 = vsel %vm753_vm10, %v754_v55, %v752_v5  ;;  %v655_v47 = vmax.f32 %v651_v1, 0.0 }
 0x26b   : > { %v765_v62 = vmul.f32 %v1150_v29, %v755_v24  ;;  %v757_v48 = vmul.f32 %v1371_v9, %v1974_v33  ;;  %v738_v0 = vsel %vm737_vm11, %v1971_v32, %v736_v28  ;;  %v1373_v53 = vpop.eup %1372  ;;  %1380 = vrsqrt.f32 %v2085_v20 }
 0x26c   : > { %660 = vst [vmem:[%s2062_s29] sm:$0xff] %v656_v10  ;;  %v653_v52 = vmax.f32 %v649_v23, 0.0  ;;  %v659_v57 = vmin.f32 %v655_v47, 1.0  ;;  %v741_v58 = vsel %vm739_vm12, %v740_v63, %v738_v0  ;;  %v743_v7 = vmul.f32 %v1373_v53, %v1995_v45 }
 0x26d   : > { %v769_v29 = vadd.f32 %v765_v62, %v1933_v6  ;;  %v759_v59 = vsel %vm758_vm13, %v1974_v33, %v757_v48  ;;  %v1375_v60 = vpop.eup %1374  ;;  %v763_v2 = vmul.f32 %v1146_v30, %v741_v58  ;;  %v874_v33 = vand.u32 2147483648, %v1998_v46 }
 0x26e   : > { %v657_v55 = vmin.f32 %v653_v52, 1.0  ;;  %v762_v3 = vsel %vm760_vm14, %v761_v36, %v759_v59  ;;  %663 = vst [vmem:[%s2062_s29 + $0x18] sm:$0xff] %v659_v57  ;;  %v870_v63 = vmul.f32 %v1375_v60, %v1998_v46  ;;  %v745_v30 = vsel %vm744_vm15, %v1995_v45, %v743_v7 }
 0x26f   : > { %v773_v6 = vmax.f32 %v769_v29, 0.0  ;;  %v766_v32 = vmul.f32 %v1151_v31, %v762_v3  ;;  %v767_v8 = vadd.f32 %v763_v2, %v1956_v21  ;;  %v748_v31 = vsel %vm746_vm0, %v747_v49, %v745_v30 }
 0x270   : > { %661 = vst [vmem:[%s2062_s29 + $0x8] sm:$0xff] %v657_v55  ;;  %v872_v51 = vsel %vm871_vm1, %v1998_v46, %v870_v63  ;;  %v1377_v21 = vpop.eup %1376  ;;  %v764_v17 = vmul.f32 %v1147_v35, %v748_v31  ;;  %v860_v46 = vand.u32 2147483648, %v2028_v11  ;;  %vm880_vm6 = vcmp.eq.f32.partialorder %v2034_v16, 0.0 }
 0x271   : > { %v777_v15 = vmin.f32 %v773_v6, 1.0  ;;  %v770_v13 = vadd.f32 %v766_v32, %v1958_v22  ;;  %v771_v61 = vmax.f32 %v767_v8, 0.0  ;;  %v875_v18 = vsel %vm873_vm2, %v874_v33, %v872_v51 }
 0x272   : > { %v885_v25 = vmul.f32 %v1166_v38, %v875_v18  ;;  %v1162_v22 = vunpack.c.l.bf16 %v1179_v12  ;;  %v856_v45 = vmul.f32 %v1377_v21, %v2028_v11  ;;  %v768_v36 = vadd.f32 %v764_v17, %v1976_v34  ;;  %v1379_v14 = vpop.eup %1378 }
 0x273   : > { %1092 = vst [vmem:[%s2062_s29 + $0x30] sm:$0xff] %v777_v15  ;;  %v774_v19 = vmax.f32 %v770_v13, 0.0  ;;  %v775_v27 = vmin.f32 %v771_v61, 1.0  ;;  %v877_v34 = vmul.f32 %v1379_v14, %v2034_v16  ;;  %v1163_v47 = vunpack.c.h.bf16 %v1179_v12 }
 0x274   : > { %v889_v39 = vadd.f32 %v885_v25, %v1981_v37  ;;  %v858_v40 = vsel %vm857_vm3, %v2028_v11, %v856_v45  ;;  %v772_v38 = vmax.f32 %v768_v36, 0.0  ;;  %v881_v37 = vand.u32 2147483648, %v2034_v16 }
 0x275   : > { %v778_v35 = vmin.f32 %v774_v19, 1.0  ;;  %1090 = vst [vmem:[%s2062_s29 + $0x20] sm:$0xff] %v775_v27  ;;  %v861_v41 = vsel %vm859_vm4, %v860_v46, %v858_v40  ;;  %v879_v1 = vsel %vm878_vm5, %v2034_v16, %v877_v34  ;;  %vm864_vm7 = vcmp.eq.f32.partialorder %v2085_v20, inf }
 0x276   : > { %v893_v43 = vmax.f32 %v889_v39, 0.0  ;;  %v883_v56 = vmul.f32 %v1162_v22, %v861_v41  ;;  %v776_v44 = vmin.f32 %v772_v38, 1.0  ;;  %v882_v9 = vsel %vm880_vm6, %v881_v37, %v879_v1 }
 0x277   : > { %1093 = vst [vmem:[%s2062_s29 + $0x38] sm:$0xff] %v778_v35  ;;  %v886_v26 = vmul.f32 %v1167_v42, %v882_v9  ;;  %vm866_vm8 = vcmp.eq.f32.partialorder %v2085_v20, 0.0 }
 0x278   : > { %v897_v11 = vmin.f32 %v893_v43, 1.0  ;;  %v887_v5 = vadd.f32 %v883_v56, %v2005_v50  ;;  %1091 = vst [vmem:[%s2062_s29 + $0x28] sm:$0xff] %v776_v44  ;;  %v1381_v23 = vpop.eup %1380  ;;  %v867_v50 = vand.u32 2147483648, %v2085_v20 }
 0x279   : > { %v890_v24 = vadd.f32 %v886_v26, %v2011_v54  ;;  %v863_v62 = vmul.f32 %v1381_v23, %v2085_v20 }
 0x27a   : > { %1106 = vst [vmem:[%s2062_s29 + $0x50] sm:$0xff] %v897_v11  ;;  %v891_v10 = vmax.f32 %v887_v5, 0.0 }
 0x27b   : > { %v894_v16 = vmax.f32 %v890_v24, 0.0  ;;  %v865_v48 = vsel %vm864_vm7, %v2085_v20, %v863_v62 }
 0x27c   : > { %v895_v28 = vmin.f32 %v891_v10, 1.0  ;;  %v868_v54 = vsel %vm866_vm8, %v867_v50, %v865_v48 }
 0x27d   : > { %v898_v49 = vmin.f32 %v894_v16, 1.0  ;;  %v884_v52 = vmul.f32 %v1163_v47, %v868_v54 }
 0x27e   : > { %1104 = vst [vmem:[%s2062_s29 + $0x40] sm:$0xff] %v895_v28 }
 0x27f   : > { %1107 = vst [vmem:[%s2062_s29 + $0x58] sm:$0xff] %v898_v49  ;;  %v888_v0 = vadd.f32 %v884_v52, %v2058_v4 }
 0x281   : > { %v892_v53 = vmax.f32 %v888_v0, 0.0 }
 0x283   : > { %v896_v57 = vmin.f32 %v892_v53, 1.0 }
 0x285   : > { %1105 = vst [vmem:[%s2062_s29 + $0x48] sm:$0xff] %v896_v57 }
 0x286   : > { %1531 = shalt.err (!%p1528_p5)
}
 0x287   : > { %s1532_s28 = scalar_lea.hbm %s2154_s14, 1536  ;;  %s1536_s17 = scalar_lea.hbm %s2205_s5, 3072 }
 0x288   : > { %p1533_p12 = scmp.ne.s32.totalorder %s2154_s14, %s1532_s28  ;;  %p1537_p3 = scmp.lt.s32.totalorder %s2154_s14, %s2205_s5 }
 0x289   : > { %p1538_p4 = scmp.lt.s32.totalorder %s1536_s17, %s1532_s28 }
 0x28a   : > { %p1534_p0 = pnand %p1533_p12, %p2246_p13 }
 0x28b   : > { %p1539_p8 = por %p1538_p4, %p1537_p3 }
 0x28c   : > { %p1535_p11 = pneg %p1534_p0 }
 0x28e   : > { %p1540_p6 = pnand %p1539_p8, %p1535_p11 }
 0x290   : > { %1543 = shalt.err (!%p1540_p6)
}
 0x291   : > { %s1602_s16 = smov 128   ;;  %s1603_s25 = smov 8  }
 0x292   : > { %1279 = dma.vmem_to_hbm [thread:$0]  (%p2246_p13), %s2156_s13, 1536, %s2154_s14, %s905_s15, %s1602_s16, %s1602_s16, %s1603_s25  }
 0x293 PF: > { %s934_s9 = sand.u32 1, %s1578_s18   ;;  %p2247_p2 = scmp.ne.s32.totalorder %s2229_s6, 0 }
 0x294   : > { %p2248_p7 = scmp.ge.s32.totalorder %s1590_s21, 2  ;;  %s935_s12 = scalar_lea.sflag [#allocation4], %s934_s9 }
 0x296   : > { %p1299_p9 = pnand %p2248_p7, %p2247_p2 }
 0x298   : > { %p1300_p10 = pneg %p1299_p9 }
 0x29a   : > { %1573 = dma.done.wait (%p1300_p10), %s935_s12, 1536  }
 0x29b   : > { %1575 = vsyncadd (%p1300_p10), %s935_s12, 4294965760  ;;  %s2249_s21 = sld [smem:[#allocation17_spill]]  ;;  %s2252_s18 = smov %s1582_s19 }
 0x29c   : > { %s2250_s29 = sld [smem:[#allocation16_spill]] }
 0x29d   : > { %s2251_s20 = sld [smem:[#allocation18_spill]] }
 0x2a1   : > { %p22_p1 = scmp.ge.s32.totalorder %s2249_s21, 4  }
 0x2a2   : > { %s2253_s19 = smov %s2250_s29 }
 0x2a3   :  { %24 = sbr.rel (!%p22_p1) target bundleno = 11 (0xb), region = 123 }
 0x2a8   :  { %940 = vsyncpa [#allocation3], 1 }
 0x2a9   :  { %942 = vsyncpa [#allocation3 + $0x1], 1 }
 0x2aa   :  { %943 = vsyncpa [#allocation6], 1 }
 0x2ab   :  { %945 = vsyncpa [#allocation6 + $0x1], 1 }
 0x2ac   :  { %946 = vsyncpa [#allocation9], 1 }
 0x2ad   :  { %947 = vsyncpa [#allocation4], 1 }
 0x2ae   :  { %949 = vsyncpa [#allocation4 + $0x1], 1 }

</bundles_post_ra>
